<compile_context>
chip_gen: v6e
topology: v6e:2x2x1
jax: 0.10.0
libtpu: 0.0.40
codegen_flags: <defaults>
</compile_context>

<pallas_src>
import math
import functools

import jax
import jax.numpy as jnp
from jax.experimental import pallas as pl
from jax.experimental.pallas import tpu as pltpu

LANE = 128
BATCH_ALIGN = 16                 # bf16 sublane packing is (16, 128)
MIB = 1024 * 1024


def B(rho):
    """Same as the PyTorch helper."""
    return 0.0 if rho == 1 else (math.sqrt(1.0 - (rho - 1.0) ** 2) - 1.0) / (rho - 1.0)


def _round_up(n, m):
    return ((n + m - 1) // m) * m


def _tpu_vmem_capacity_bytes():
    try:
        return int(pltpu.get_tpu_info().vmem_capacity_bytes)
    except Exception:
        return 128 * MIB          # v5e / v6e physical VMEM


# --------------------------------------------------------------------------- #
# Kernel
# --------------------------------------------------------------------------- #
def _densenet_kernel(b_coeff, n_hidden, *refs):
    """Fused DenseNet forward for one batch tile.

    refs = (x_ref, w1_ref, ..., wN_ref, wr_ref, out_ref)
      x_ref  : (TB, D0)         bf16 padded activations
      wi_ref : (D_{i-1}, D_i)   bf16 padded hidden weights (resident, 1-buffered)
      wr_ref : (D_N, 128)       bf16 readout weight; real vector in column 0
      out_ref: (TB, 128)        bf16 output; real result lives in column 0
    """
    x_ref = refs[0]
    w_refs = refs[1:1 + n_hidden]
    wr_ref = refs[1 + n_hidden]
    out_ref = refs[2 + n_hidden]

    h = x_ref[...]                                           # bf16
    for w_ref in w_refs:
        acc = jnp.dot(h, w_ref[...], preferred_element_type=jnp.float32)  # MXU bf16, f32 acc
        if b_coeff == 0.0:
            # rho == 1  =>  plain ReLU; skip the dead vmin/vmul/vadd (trace-time).
            acc = jnp.maximum(acc, 0.0)
        else:
            # ABReLU in f32 on the VPU (v5e-friendly).
            acc = b_coeff * jnp.minimum(acc, 0.0) + jnp.maximum(acc, 0.0)
        h = acc.astype(jnp.bfloat16)

    # Readout on the MXU against the zero-padded (D_N, 128) weight: lane-dense
    # (TB, 128) result, column 0 is the real readout, columns 1.. are exact zeros.
    y = jnp.dot(h, wr_ref[...], preferred_element_type=jnp.float32)
    out_ref[...] = y.astype(out_ref.dtype)


# --------------------------------------------------------------------------- #
# Wrappers
# --------------------------------------------------------------------------- #
def prepare_densenet_params(hidden_weights, readout_weight):
    """Pad feature dims to multiples of 128 and cast to bf16.  Call ONCE and reuse.

    hidden_weights: list of (in, out) arrays.  readout_weight: (in, 1).
    Zero padding is exact: padded columns stay 0 through ABReLU and the readout.
    """
    ws_p = []
    for w in hidden_weights:
        d_in, d_out = w.shape
        wp = jnp.zeros((_round_up(d_in, LANE), _round_up(d_out, LANE)), jnp.bfloat16)
        wp = wp.at[:d_in, :d_out].set(w.astype(jnp.bfloat16))
        ws_p.append(wp)
    d_last = readout_weight.shape[0]
    wr_p = jnp.zeros((_round_up(d_last, LANE), LANE), jnp.bfloat16)
    wr_p = wr_p.at[:d_last, 0].set(readout_weight[:, 0].astype(jnp.bfloat16))
    return tuple(ws_p), wr_p


def _pick_batch_tiling(batch, vmem_cap):
    """Generation-aware batch tiling."""
    small_vmem = vmem_cap <= 96 * MIB          # v7x-like: 64 MiB / TC, 2 TCs
    max_tile = 256 if small_vmem else 512
    batch_a = _round_up(batch, BATCH_ALIGN)
    tb = min(batch_a, max_tile)
    if small_vmem and batch_a >= 2 * BATCH_ALIGN:
        # Guarantee >= 2 grid tiles so the "parallel" batch axis actually
        # shards across both v7x TensorCores.
        tb = min(tb, _round_up((batch_a + 1) // 2, BATCH_ALIGN))
    batch_pad = _round_up(batch_a, tb)
    return tb, batch_pad


def densenet_forward_padded(x, ws_p, wr_p, rho=1):
    """x: (batch, inp_dim) f32; ws_p / wr_p: prepared padded bf16 weights."""
    batch, inp_dim = x.shape
    n_hidden = len(ws_p)
    b_coeff = B(rho)

    if n_hidden == 0:
        dims_pad = [wr_p.shape[0]]
    else:
        dims_pad = [ws_p[0].shape[0]] + [w.shape[1] for w in ws_p]
    d0 = dims_pad[0]

    vmem_cap = _tpu_vmem_capacity_bytes()
    tb, batch_pad = _pick_batch_tiling(batch, vmem_cap)
    num_tiles = batch_pad // tb

    # Zero-pad the activations (exact).
    x_p = jnp.zeros((batch_pad, d0), jnp.bfloat16).at[:batch, :inp_dim].set(
        x.astype(jnp.bfloat16))

    # --- VMEM budget ---------------------------------------------------------
    # resident weights (single-buffered) + double-buffered activation/out tiles
    # + live per-layer intermediates (bf16 h_in + f32 acc) + Mosaic scratch headroom.
    weight_bytes = (sum(int(w.size) for w in ws_p) + int(wr_p.size)) * 2
    io_bytes = 2 * tb * d0 * 2 + 2 * tb * LANE * 2
    d_max = max(dims_pad)
    live_bytes = tb * d_max * 2 + tb * d_max * 4 + tb * LANE * 4
    vmem_needed = weight_bytes + io_bytes + live_bytes + 2 * MIB
    vmem_limit = None
    if vmem_needed > 16 * MIB:                     # smallest scoped default (v5e)
        vmem_limit = int(min(vmem_needed, int(0.85 * vmem_cap)))
    # TODO(synk): if vmem_needed exceeds 0.85*vmem_cap, switch to K-tiled weights.

    kernel = functools.partial(_densenet_kernel, b_coeff, n_hidden)

    def build(single_buffer_weights):
        in_specs = [pl.BlockSpec((tb, d0), lambda i: (i, 0))]
        wkw = {"pipeline_mode": pl.Buffered(1)} if single_buffer_weights else {}
        for wp in ws_p:
            in_specs.append(pl.BlockSpec(wp.shape, lambda i: (0, 0), **wkw))
        in_specs.append(pl.BlockSpec(wr_p.shape, lambda i: (0, 0), **wkw))
        out_spec = pl.BlockSpec((tb, LANE), lambda i: (i, 0))
        return pl.pallas_call(
            kernel,
            out_shape=jax.ShapeDtypeStruct((batch_pad, LANE), jnp.bfloat16),
            grid=(num_tiles,),
            in_specs=in_specs,
            out_specs=out_spec,
            compiler_params=pltpu.CompilerParams(
                dimension_semantics=("parallel",),
                vmem_limit_bytes=vmem_limit,
            ),
        )

    try:
        out = build(True)(x_p, *ws_p, wr_p)
    except Exception:
        # Fallback if this JAX build rejects single-buffered pipeline_mode.
        out = build(False)(x_p, *ws_p, wr_p)

    # Un-pad batch, take real readout column, torch.squeeze(x, -1) semantics.
    return out[:batch, 0].astype(jnp.float32)


def densenet_forward(x, hidden_weights, readout_weight, rho=1):
    """Convenience path (pads weights every call; prefer prepare_... + *_padded)."""
    ws_p, wr_p = prepare_densenet_params(hidden_weights, readout_weight)
    return densenet_forward_padded(x, ws_p, wr_p, rho=rho)


# --------------------------------------------------------------------------- #
# Init + reference
# --------------------------------------------------------------------------- #
def init_densenet_params(key, inp_dim, hdims, rho=1):
    """Matches the PyTorch piecewise_linear init; weights returned as (in, out)."""
    b = B(rho)
    keys = jax.random.split(key, len(hdims) + 1)
    hidden_weights = []
    dims_in = [inp_dim] + hdims[:-1]
    for k, _in, _out in zip(keys[:-1], dims_in, hdims):
        std = math.sqrt(2.0 / ((b - 1.0) ** 2 * _in))
        hidden_weights.append(std * jax.random.normal(k, (_in, _out), dtype=jnp.float32))
    readout_in = hdims[-1] if len(hdims) > 0 else inp_dim
    std_r = math.sqrt(2.0 / ((b - 1.0) ** 2 * readout_in))
    w_r = std_r * jax.random.normal(keys[-1], (readout_in, 1), dtype=jnp.float32)
    return hidden_weights, w_r


def _reference_forward(x, hidden_weights, readout_weight, rho=1, dtype=jnp.float32):
    """Pure-JAX reference; dtype=bf16 mirrors the kernel's MXU datapath."""
    b = B(rho)
    h = x.astype(jnp.float32)
    for w in hidden_weights:
        a = jnp.dot(h.astype(dtype), w.astype(dtype), preferred_element_type=jnp.float32)
        h = b * jnp.minimum(a, 0.0) + jnp.maximum(a, 0.0)
    y = jnp.dot(h.astype(dtype), readout_weight.astype(dtype),
                preferred_element_type=jnp.float32)
    return jnp.squeeze(y, axis=-1)


if __name__ == "__main__":
    key = jax.random.PRNGKey(0)
    k_x, k_w = jax.random.split(key)

    batch, inp_dim = 8, 32
    hdims = [32, 32]

    x = jax.random.normal(k_x, (batch, inp_dim), dtype=jnp.float32)

    for rho in (1, 1.5):   # rho=1 -> ReLU specialization; rho=1.5 -> general ABReLU
        hidden_weights, readout_weight = init_densenet_params(k_w, inp_dim, hdims, rho)

        # Hoisted: pad/cast weights once, reuse across forwards.
        ws_p, wr_p = prepare_densenet_params(hidden_weights, readout_weight)

        y = densenet_forward_padded(x, ws_p, wr_p, rho=rho)
        y = jax.block_until_ready(y)
        assert y.shape == (batch,), y.shape

        # Reference matching the kernel's bf16 matmul / f32 accumulate datapath.
        y_ref_bf16 = _reference_forward(x, hidden_weights, readout_weight, rho=rho,
                                        dtype=jnp.bfloat16)
        assert jnp.allclose(y, y_ref_bf16, atol=2e-2, rtol=2e-2), (rho, y, y_ref_bf16)

        # Loose sanity check against the full-f32 reference.
        y_ref_f32 = _reference_forward(x, hidden_weights, readout_weight, rho=rho)
        assert jnp.allclose(y, y_ref_f32, atol=1e-1, rtol=1e-1), (rho, y, y_ref_f32)

    print("KERNEL_OK")
</pallas_src>

<mosaic_0001>
module attributes {stable_mosaic.version = 11 : i64} {
  func.func @_densenet_kernel(%arg0: i32, %arg1: memref<16x128xbf16, #tpu.memory_space<vmem>>, %arg2: memref<128x128xbf16, #tpu.memory_space<vmem>>, %arg3: memref<128x128xbf16, #tpu.memory_space<vmem>>, %arg4: memref<128x128xbf16, #tpu.memory_space<vmem>>, %arg5: memref<16x128xbf16, #tpu.memory_space<vmem>>) attributes {dimension_semantics = [#tpu.dimension_semantics<parallel>], iteration_bounds = array<i64: 1>, scalar_prefetch = 0 : i64, scratch_operands = 0 : i64, tpu.core_type = #tpu.core_type<tc>, window_params = [{transform_indices = @transform_0, window_bounds = array<i64: 16, 128>}, {pipeline_mode = #tpu.pipeline_mode<synchronous>, transform_indices = @transform_1, window_bounds = array<i64: 128, 128>}, {pipeline_mode = #tpu.pipeline_mode<synchronous>, transform_indices = @transform_2, window_bounds = array<i64: 128, 128>}, {pipeline_mode = #tpu.pipeline_mode<synchronous>, transform_indices = @transform_3, window_bounds = array<i64: 128, 128>}, {transform_indices = @transform_4, window_bounds = array<i64: 16, 128>}]} {
    %c0 = arith.constant 0 : index
    %c0_0 = arith.constant 0 : index
    %0 = vector.load %arg1[%c0, %c0_0] : memref<16x128xbf16, #tpu.memory_space<vmem>>, vector<16x128xbf16>
    %c0_1 = arith.constant 0 : index
    %c0_2 = arith.constant 0 : index
    %1 = vector.load %arg2[%c0_1, %c0_2] : memref<128x128xbf16, #tpu.memory_space<vmem>>, vector<128x128xbf16>
    %cst = arith.constant dense<0.000000e+00> : vector<16x128xf32>
    %2 = tpu.matmul %0, %1, %cst {dimension_numbers = #tpu.dot_dimension_numbers<[1], [0], [0], [1], [0, 0, 1, 1], [], []>} : vector<16x128xbf16>, vector<128x128xbf16>, vector<16x128xf32> -> vector<16x128xf32>
    %cst_3 = arith.constant 0.000000e+00 : f32
    %3 = vector.broadcast %cst_3 : f32 to vector<16x128xf32>
    %4 = arith.maximumf %2, %3 : vector<16x128xf32>
    %5 = arith.truncf %4 : vector<16x128xf32> to vector<16x128xbf16>
    %c0_4 = arith.constant 0 : index
    %c0_5 = arith.constant 0 : index
    %6 = vector.load %arg3[%c0_4, %c0_5] : memref<128x128xbf16, #tpu.memory_space<vmem>>, vector<128x128xbf16>
    %cst_6 = arith.constant dense<0.000000e+00> : vector<16x128xf32>
    %7 = tpu.matmul %5, %6, %cst_6 {dimension_numbers = #tpu.dot_dimension_numbers<[1], [0], [0], [1], [0, 0, 1, 1], [], []>} : vector<16x128xbf16>, vector<128x128xbf16>, vector<16x128xf32> -> vector<16x128xf32>
    %cst_7 = arith.constant 0.000000e+00 : f32
    %8 = vector.broadcast %cst_7 : f32 to vector<16x128xf32>
    %9 = arith.maximumf %7, %8 : vector<16x128xf32>
    %10 = arith.truncf %9 : vector<16x128xf32> to vector<16x128xbf16>
    %c0_8 = arith.constant 0 : index
    %c0_9 = arith.constant 0 : index
    %11 = vector.load %arg4[%c0_8, %c0_9] : memref<128x128xbf16, #tpu.memory_space<vmem>>, vector<128x128xbf16>
    %cst_10 = arith.constant dense<0.000000e+00> : vector<16x128xf32>
    %12 = tpu.matmul %10, %11, %cst_10 {dimension_numbers = #tpu.dot_dimension_numbers<[1], [0], [0], [1], [0, 0, 1, 1], [], []>} : vector<16x128xbf16>, vector<128x128xbf16>, vector<16x128xf32> -> vector<16x128xf32>
    %13 = arith.truncf %12 : vector<16x128xf32> to vector<16x128xbf16>
    %c0_11 = arith.constant 0 : index
    %c0_12 = arith.constant 0 : index
    %14 = vector.load %arg5[%c0_11, %c0_12] : memref<16x128xbf16, #tpu.memory_space<vmem>>, vector<16x128xbf16>
    tpu.vector_store %arg5[%c0_11, %c0_12], %13 {strides = array<i32>} : memref<16x128xbf16, #tpu.memory_space<vmem>>, vector<16x128xbf16>,
    return
  }
  func.func @transform_0(%arg0: i32) -> (i32, i32) {
    %c0_i32 = arith.constant 0 : i32
    %c0_i32_0 = arith.constant 0 : i32
    return %arg0, %c0_i32 : i32, i32
  }
  func.func @transform_1(%arg0: i32) -> (i32, i32) {
    %c0_i32 = arith.constant 0 : i32
    %c0_i32_0 = arith.constant 0 : i32
    %c0_i32_1 = arith.constant 0 : i32
    return %c0_i32, %c0_i32_0 : i32, i32
  }
  func.func @transform_2(%arg0: i32) -> (i32, i32) {
    %c0_i32 = arith.constant 0 : i32
    %c0_i32_0 = arith.constant 0 : i32
    %c0_i32_1 = arith.constant 0 : i32
    return %c0_i32, %c0_i32_0 : i32, i32
  }
  func.func @transform_3(%arg0: i32) -> (i32, i32) {
    %c0_i32 = arith.constant 0 : i32
    %c0_i32_0 = arith.constant 0 : i32
    %c0_i32_1 = arith.constant 0 : i32
    return %c0_i32, %c0_i32_0 : i32, i32
  }
  func.func @transform_4(%arg0: i32) -> (i32, i32) {
    %c0_i32 = arith.constant 0 : i32
    %c0_i32_0 = arith.constant 0 : i32
    return %arg0, %c0_i32 : i32, i32
  }
}

module attributes {stable_mosaic.version = 11 : i64} {
  func.func @_densenet_kernel(%arg0: i32, %arg1: memref<16x128xbf16, #tpu.memory_space<vmem>>, %arg2: memref<128x128xbf16, #tpu.memory_space<vmem>>, %arg3: memref<128x128xbf16, #tpu.memory_space<vmem>>, %arg4: memref<128x128xbf16, #tpu.memory_space<vmem>>, %arg5: memref<16x128xbf16, #tpu.memory_space<vmem>>) attributes {dimension_semantics = [#tpu.dimension_semantics<parallel>], iteration_bounds = array<i64: 1>, scalar_prefetch = 0 : i64, scratch_operands = 0 : i64, tpu.core_type = #tpu.core_type<tc>, window_params = [{transform_indices = @transform_0, window_bounds = array<i64: 16, 128>}, {pipeline_mode = #tpu.pipeline_mode<synchronous>, transform_indices = @transform_1, window_bounds = array<i64: 128, 128>}, {pipeline_mode = #tpu.pipeline_mode<synchronous>, transform_indices = @transform_2, window_bounds = array<i64: 128, 128>}, {pipeline_mode = #tpu.pipeline_mode<synchronous>, transform_indices = @transform_3, window_bounds = array<i64: 128, 128>}, {transform_indices = @transform_4, window_bounds = array<i64: 16, 128>}]} {
    %c0 = arith.constant 0 : index
    %c0_0 = arith.constant 0 : index
    %0 = vector.load %arg1[%c0, %c0_0] : memref<16x128xbf16, #tpu.memory_space<vmem>>, vector<16x128xbf16>
    %c0_1 = arith.constant 0 : index
    %c0_2 = arith.constant 0 : index
    %1 = vector.load %arg2[%c0_1, %c0_2] : memref<128x128xbf16, #tpu.memory_space<vmem>>, vector<128x128xbf16>
    %cst = arith.constant dense<0.000000e+00> : vector<16x128xf32>
    %2 = tpu.matmul %0, %1, %cst {dimension_numbers = #tpu.dot_dimension_numbers<[1], [0], [0], [1], [0, 0, 1, 1], [], []>} : vector<16x128xbf16>, vector<128x128xbf16>, vector<16x128xf32> -> vector<16x128xf32>
    %cst_3 = arith.constant 0.000000e+00 : f32
    %3 = vector.broadcast %cst_3 : f32 to vector<16x128xf32>
    %4 = arith.maximumf %2, %3 : vector<16x128xf32>
    %5 = arith.truncf %4 : vector<16x128xf32> to vector<16x128xbf16>
    %c0_4 = arith.constant 0 : index
    %c0_5 = arith.constant 0 : index
    %6 = vector.load %arg3[%c0_4, %c0_5] : memref<128x128xbf16, #tpu.memory_space<vmem>>, vector<128x128xbf16>
    %cst_6 = arith.constant dense<0.000000e+00> : vector<16x128xf32>
    %7 = tpu.matmul %5, %6, %cst_6 {dimension_numbers = #tpu.dot_dimension_numbers<[1], [0], [0], [1], [0, 0, 1, 1], [], []>} : vector<16x128xbf16>, vector<128x128xbf16>, vector<16x128xf32> -> vector<16x128xf32>
    %cst_7 = arith.constant 0.000000e+00 : f32
    %8 = vector.broadcast %cst_7 : f32 to vector<16x128xf32>
    %9 = arith.maximumf %7, %8 : vector<16x128xf32>
    %10 = arith.truncf %9 : vector<16x128xf32> to vector<16x128xbf16>
    %c0_8 = arith.constant 0 : index
    %c0_9 = arith.constant 0 : index
    %11 = vector.load %arg4[%c0_8, %c0_9] : memref<128x128xbf16, #tpu.memory_space<vmem>>, vector<128x128xbf16>
    %cst_10 = arith.constant dense<0.000000e+00> : vector<16x128xf32>
    %12 = tpu.matmul %10, %11, %cst_10 {dimension_numbers = #tpu.dot_dimension_numbers<[1], [0], [0], [1], [0, 0, 1, 1], [], []>} : vector<16x128xbf16>, vector<128x128xbf16>, vector<16x128xf32> -> vector<16x128xf32>
    %13 = arith.truncf %12 : vector<16x128xf32> to vector<16x128xbf16>
    %c0_11 = arith.constant 0 : index
    %c0_12 = arith.constant 0 : index
    %14 = vector.load %arg5[%c0_11, %c0_12] : memref<16x128xbf16, #tpu.memory_space<vmem>>, vector<16x128xbf16>
    tpu.vector_store %arg5[%c0_11, %c0_12], %13 {strides = array<i32>} : memref<16x128xbf16, #tpu.memory_space<vmem>>, vector<16x128xbf16>,
    return
  }
  func.func @transform_0(%arg0: i32) -> (i32, i32) {
    %c0_i32 = arith.constant 0 : i32
    %c0_i32_0 = arith.constant 0 : i32
    return %arg0, %c0_i32 : i32, i32
  }
  func.func @transform_1(%arg0: i32) -> (i32, i32) {
    %c0_i32 = arith.constant 0 : i32
    %c0_i32_0 = arith.constant 0 : i32
    %c0_i32_1 = arith.constant 0 : i32
    return %c0_i32, %c0_i32_0 : i32, i32
  }
  func.func @transform_2(%arg0: i32) -> (i32, i32) {
    %c0_i32 = arith.constant 0 : i32
    %c0_i32_0 = arith.constant 0 : i32
    %c0_i32_1 = arith.constant 0 : i32
    return %c0_i32, %c0_i32_0 : i32, i32
  }
  func.func @transform_3(%arg0: i32) -> (i32, i32) {
    %c0_i32 = arith.constant 0 : i32
    %c0_i32_0 = arith.constant 0 : i32
    %c0_i32_1 = arith.constant 0 : i32
    return %c0_i32, %c0_i32_0 : i32, i32
  }
  func.func @transform_4(%arg0: i32) -> (i32, i32) {
    %c0_i32 = arith.constant 0 : i32
    %c0_i32_0 = arith.constant 0 : i32
    return %arg0, %c0_i32 : i32, i32
  }
}

</mosaic_0001>

<bundles_post_ra>
// kernel: tpu_custom_call.1
= control target key start
LH: loop header
LB: loop body
LE: loop exit
PB: predicated region body
PF: predicated region fallthrough
CT: control target
= control target key end

     0   :  { %9 = vsyncpa [#allocation3], 0  ;;  %s789_s0 = inlined_call_operand.hbm [shape: bf16[16,128], index: 0, kind: input, shape index: {}]   ;;  %s790_s1 = inlined_call_operand.hbm [shape: bf16[128,128], index: 1, kind: input, shape index: {}]   ;;  %s791_s2 = inlined_call_operand.hbm [shape: bf16[128,128], index: 2, kind: input, shape index: {}]   ;;  %s792_s3 = inlined_call_operand.hbm [shape: bf16[128,128], index: 3, kind: input, shape index: {}]   ;;  %s793_s4 = inlined_call_operand.hbm [shape: bf16[16,128], index: 4, kind: output, shape index: {}]  }
   0x1   :  { %10 = vsyncpa [#allocation6], 0 }
   0x2   :  { %11 = vsyncpa [#allocation9], 0 }
   0x3   :  { %12 = vsyncpa [#allocation4], 0  ;;  %s695_s15 = smov [#allocation5]   ;;  %s696_s17 = smov [#allocation2]  }
   0x4   :  { %s30_s16 = sshll.u32 %s695_s15, 4  ;;  %s18_s18 = sshll.u32 %s696_s17, 4  ;;  %s31_s16 = int_to_ptr.vmem [resolvable:$true] %s30_s16  ;;  %s19_s18 = int_to_ptr.vmem [resolvable:$true] %s18_s18 }
   0x5   :  { %s595_s19 = scalar_lea.vmem %s31_s16, 1024  ;;  %p600_p1 = scmp.lt.s32.totalorder %s31_s16, %s31_s16 }
   0x6   :  { %p596_p0 = scmp.ne.s32.totalorder %s31_s16, %s595_s19  ;;  %p601_p2 = scmp.lt.s32.totalorder %s595_s19, %s595_s19 }
   0x8   :  { %p602_p3 = por %p601_p2, %p600_p1 }
   0xa   :  { %p603_p4 = pnand %p602_p3, %p596_p0 }
   0xc   :  { %606 = shalt.err (!%p603_p4)
}
   0xd   :  { %s697_s20 = smov 64   ;;  %s698_s21 = smov 4  }
   0xe   :  { %36 = dma.hbm_to_vmem [thread:$0]  %s790_s1, 1024, %s31_s16, [#allocation6], %s697_s20, %s697_s20, %s698_s21  }
   0xf   :  { %s615_s24 = scalar_lea.vmem %s19_s18, 128  ;;  %p620_p6 = scmp.lt.s32.totalorder %s19_s18, %s19_s18 }
  0x10   :  { %p616_p5 = scmp.ne.s32.totalorder %s19_s18, %s615_s24  ;;  %p621_p7 = scmp.lt.s32.totalorder %s615_s24, %s615_s24 }
  0x12   :  { %p622_p8 = por %p621_p7, %p620_p6 }
  0x14   :  { %p623_p9 = pnand %p622_p8, %p616_p5 }
  0x16   :  { %626 = shalt.err (!%p623_p9)
}
  0x17   :  { %24 = dma.hbm_to_vmem [thread:$0]  %s789_s0, 128, %s19_s18, [#allocation3], %s697_s20, %s697_s20, %s698_s21  }
  0x18   :  { %s699_s27 = smov [#allocation7]   ;;  %s700_s29 = smov [#allocation8]  }
  0x19   :  { %s42_s28 = sshll.u32 %s699_s27, 4  ;;  %s54_s30 = sshll.u32 %s700_s29, 4  ;;  %s43_s28 = int_to_ptr.vmem [resolvable:$true] %s42_s28  ;;  %s55_s30 = int_to_ptr.vmem [resolvable:$true] %s54_s30 }
  0x1a   :  { %s635_s1 = scalar_lea.vmem %s43_s28, 1024  ;;  %p640_p11 = scmp.lt.s32.totalorder %s43_s28, %s43_s28 }
  0x1b   :  { %p636_p10 = scmp.ne.s32.totalorder %s43_s28, %s635_s1  ;;  %p641_p12 = scmp.lt.s32.totalorder %s635_s1, %s635_s1 }
  0x1d   :  { %p642_p13 = por %p641_p12, %p640_p11 }
  0x1f   :  { %p643_p0 = pnand %p642_p13, %p636_p10 }
  0x21   :  { %646 = shalt.err (!%p643_p0)
}
  0x22   :  { %48 = dma.hbm_to_vmem [thread:$0]  %s791_s2, 1024, %s43_s28, [#allocation6], %s697_s20, %s697_s20, %s698_s21  }
  0x23   :  { %s655_s0 = scalar_lea.vmem %s55_s30, 1024  ;;  %p660_p2 = scmp.lt.s32.totalorder %s55_s30, %s55_s30 }
  0x24   :  { %p656_p1 = scmp.ne.s32.totalorder %s55_s30, %s655_s0  ;;  %p661_p3 = scmp.lt.s32.totalorder %s655_s0, %s655_s0 }
  0x26   :  { %p662_p4 = por %p661_p3, %p660_p2 }
  0x28   :  { %p663_p5 = pnand %p662_p4, %p656_p1 }
  0x2a   :  { %666 = shalt.err (!%p663_p5)
}
  0x2b   :  { %60 = dma.hbm_to_vmem [thread:$0]  %s792_s3, 1024, %s55_s30, [#allocation9], %s697_s20, %s697_s20, %s698_s21  }
  0x2c   :  { %687 = dma.done.wait [#allocation3], 128  }
  0x2d   :  { %688 = vsyncadd [#allocation3], 4294967168 }
  0x2e   :  { %689 = dma.done.wait [#allocation6], 2048  }
  0x2f   :  { %690 = vsyncadd [#allocation6], 4294965248 }
  0x30   :  { %691 = dma.done.wait [#allocation9], 1024  }
  0x31   :  { %692 = vsyncadd [#allocation9], 4294966272  ;;  %v701_v0 = vmov 0.0   ;;  %vm702_vm0 = vmmov 0   ;;  %v562_v1 = vld [vmem:[#allocation5 + $0x38] sm:$0xff]   ;;  %v563_v2 = vld [vmem:[#allocation5 + $0x30] sm:$0xff]  }
  0x32   :  { %493 = vmatprep.subr.bf16.mxu0 %v701_v0  ;;  %509 = vmatprep.mubr.msk.bf16.mxu0 %vm702_vm0, %v701_v0  ;;  %v564_v3 = vld [vmem:[#allocation5 + $0x28] sm:$0xff]   ;;  %v571_v4 = vld [vmem:[#allocation7 + $0x38] sm:$0xff]   ;;  %v565_v5 = vld [vmem:[#allocation5 + $0x20] sm:$0xff]   ;;  %s703_s2 = smov [#allocation10]  }
  0x33   :  { %513 = vmatprep.subr.bf16.mxu1 %v701_v0  ;;  %529 = vmatprep.mubr.msk.bf16.mxu1 %vm702_vm0, %v701_v0  ;;  %v572_v6 = vld [vmem:[#allocation7 + $0x30] sm:$0xff]   ;;  %v566_v7 = vld [vmem:[#allocation5 + $0x18] sm:$0xff]   ;;  %v573_v8 = vld [vmem:[#allocation7 + $0x28] sm:$0xff]   ;;  %s418_s3 = sshll.u32 %s703_s2, 4  ;;  %s419_s3 = int_to_ptr.vmem [resolvable:$true] %s418_s3 }
  0x34   :  { %494 = vmatpush3.bf16.msra.mxu0 %v562_v1  ;;  %514 = vmatpush3.bf16.msra.mxu1 %v571_v4  ;;  %v567_v9 = vld [vmem:[#allocation5 + $0x10] sm:$0xff]   ;;  %v574_v10 = vld [vmem:[#allocation7 + $0x20] sm:$0xff]   ;;  %v568_v11 = vld [vmem:[#allocation5 + $0x8] sm:$0xff]   ;;  %s667_s9 = scalar_lea.vmem %s419_s3, 128  ;;  %p672_p7 = scmp.lt.s32.totalorder %s419_s3, %s419_s3 }
  0x35   :  { %495 = vmatprep.subr.bf16.mxu0 %v701_v0  ;;  %515 = vmatprep.subr.bf16.mxu1 %v701_v0  ;;  %v575_v12 = vld [vmem:[#allocation7 + $0x18] sm:$0xff]   ;;  %v569_v13 = vld [vmem:[#allocation5] sm:$0xff]   ;;  %v576_v14 = vld [vmem:[#allocation7 + $0x10] sm:$0xff]   ;;  %p668_p6 = scmp.ne.s32.totalorder %s419_s3, %s667_s9  ;;  %p673_p8 = scmp.lt.s32.totalorder %s667_s9, %s667_s9 }
  0x36   :  { %v570_v15 = vld [vmem:[#allocation2] sm:$0xff]   ;;  %v577_v16 = vld [vmem:[#allocation7 + $0x8] sm:$0xff]   ;;  %v578_v17 = vld [vmem:[#allocation7] sm:$0xff]  }
  0x37   :  { %v579_v18 = vld [vmem:[#allocation8 + $0x38] sm:$0xff]   ;;  %v580_v19 = vld [vmem:[#allocation8 + $0x30] sm:$0xff]   ;;  %v581_v20 = vld [vmem:[#allocation8 + $0x28] sm:$0xff]   ;;  %p674_p9 = por %p673_p8, %p672_p7 }
  0x38   :  { %496 = vmatpush3.bf16.msra.mxu0 %v563_v2  ;;  %516 = vmatpush3.bf16.msra.mxu1 %v572_v6  ;;  %v582_v21 = vld [vmem:[#allocation8 + $0x20] sm:$0xff]   ;;  %v583_v22 = vld [vmem:[#allocation8 + $0x18] sm:$0xff]   ;;  %v584_v23 = vld [vmem:[#allocation8 + $0x10] sm:$0xff]  }
  0x39   :  { %497 = vmatprep.subr.bf16.mxu0 %v701_v0  ;;  %517 = vmatprep.subr.bf16.mxu1 %v701_v0  ;;  %v585_v31 = vld [vmem:[#allocation8 + $0x8] sm:$0xff]   ;;  %v586_v32 = vld [vmem:[#allocation8] sm:$0xff]   ;;  %p675_p10 = pnand %p674_p9, %p668_p6 }
  0x3c   :  { %498 = vmatpush3.bf16.msra.mxu0 %v564_v3  ;;  %518 = vmatpush3.bf16.msra.mxu1 %v573_v8 }
  0x3d   :  { %499 = vmatprep.subr.bf16.mxu0 %v701_v0  ;;  %519 = vmatprep.subr.bf16.mxu1 %v701_v0 }
  0x40   :  { %500 = vmatpush3.bf16.msra.mxu0 %v565_v5  ;;  %520 = vmatpush3.bf16.msra.mxu1 %v574_v10 }
  0x41   :  { %501 = vmatprep.subr.bf16.mxu0 %v701_v0  ;;  %521 = vmatprep.subr.bf16.mxu1 %v701_v0 }
  0x44   :  { %502 = vmatpush3.bf16.msra.mxu0 %v566_v7  ;;  %522 = vmatpush3.bf16.msra.mxu1 %v575_v12 }
  0x45   :  { %503 = vmatprep.subr.bf16.mxu0 %v701_v0  ;;  %523 = vmatprep.subr.bf16.mxu1 %v701_v0 }
  0x48   :  { %504 = vmatpush3.bf16.msra.mxu0 %v567_v9  ;;  %524 = vmatpush3.bf16.msra.mxu1 %v576_v14 }
  0x49   :  { %505 = vmatprep.subr.bf16.mxu0 %v701_v0  ;;  %525 = vmatprep.subr.bf16.mxu1 %v701_v0 }
  0x4c   :  { %506 = vmatpush3.bf16.msra.mxu0 %v568_v11  ;;  %526 = vmatpush3.bf16.msra.mxu1 %v577_v16 }
  0x4d   :  { %507 = vmatprep.subr.bf16.mxu0 %v701_v0  ;;  %527 = vmatprep.subr.bf16.mxu1 %v701_v0 }
  0x50   :  { %508 = vmatpush3.bf16.msra.mxu0 %v569_v13  ;;  %528 = vmatpush3.bf16.msra.mxu1 %v578_v17 }
  0x51   :  { %533 = vmatprep.subr.bf16.mxu0 %v701_v0 }
  0x53   :  { %510 = vmatmul.mubr.bf16.vlgmr.msra.gmra.mxu0 %v570_v15 }
  0x54   :  { %549 = vmatprep.mubr.msk.bf16.mxu0 %vm702_vm0, %v701_v0  ;;  %534 = vmatpush3.bf16.msra.mxu0 %v579_v18 }
  0x55   :  { %535 = vmatprep.subr.bf16.mxu0 %v701_v0 }
  0x58   :  { %536 = vmatpush3.bf16.msra.mxu0 %v580_v19 }
  0x59   :  { %537 = vmatprep.subr.bf16.mxu0 %v701_v0 }
  0x5c   :  { %538 = vmatpush3.bf16.msra.mxu0 %v581_v20 }
  0x5d   :  { %539 = vmatprep.subr.bf16.mxu0 %v701_v0 }
  0x60   :  { %540 = vmatpush3.bf16.msra.mxu0 %v582_v21 }
  0x61   :  { %541 = vmatprep.subr.bf16.mxu0 %v701_v0 }
  0x64   :  { %542 = vmatpush3.bf16.msra.mxu0 %v583_v22 }
  0x65   :  { %543 = vmatprep.subr.bf16.mxu0 %v701_v0 }
  0x68   :  { %544 = vmatpush3.bf16.msra.mxu0 %v584_v23 }
  0x69   :  { %545 = vmatprep.subr.bf16.mxu0 %v701_v0 }
  0x6c   :  { %546 = vmatpush3.bf16.msra.mxu0 %v585_v31 }
  0x6d   :  { %547 = vmatprep.subr.bf16.mxu0 %v701_v0 }
  0x70   :  { %548 = vmatpush3.bf16.msra.mxu0 %v586_v32 }
 0x113   :  { %v180_v24 = vpop.f32.mrf.mxu0 }
 0x114   :  { %v187_v27 = vmax.f32 %v180_v24, 0.0 }
 0x115   :  { %v511_v25 = vpop.f32.mrf.mxu0 }
 0x117   :  { %v183_v26 = vpop.f32.mrf.mxu0 }
 0x118   :  { %v188_v28 = vmax.f32 %v183_v26, 0.0 }
 0x119   :  { %v512_v29 = vpop.f32.mrf.mxu0 }
 0x11a   :  { %v189_v30 = vpack.c.bf16 %v188_v28, %v187_v27 }
 0x11c   :  { %530 = vmatmul.mubr.bf16.vlgmr.msra.gmra.mxu1 %v189_v30 }
 0x1dc   :  { %v288_v33 = vpop.f32.mrf.mxu1 }
 0x1dd   :  { %v295_v36 = vmax.f32 %v288_v33, 0.0 }
 0x1de   :  { %v531_v34 = vpop.f32.mrf.mxu1 }
 0x1e0   :  { %v291_v35 = vpop.f32.mrf.mxu1 }
 0x1e1   :  { %v296_v37 = vmax.f32 %v291_v35, 0.0 }
 0x1e2   :  { %v532_v38 = vpop.f32.mrf.mxu1 }
 0x1e3   :  { %v297_v39 = vpack.c.bf16 %v296_v37, %v295_v36 }
 0x1e5   :  { %550 = vmatmul.mubr.bf16.vlgmr.msra.gmra.mxu0 %v297_v39 }
 0x2a5   :  { %v396_v40 = vpop.f32.mrf.mxu0 }
 0x2a7   :  { %v551_v41 = vpop.f32.mrf.mxu0 }
 0x2a9   :  { %v399_v42 = vpop.f32.mrf.mxu0 }
 0x2aa   :  { %v464_v43 = vpack.c.bf16 %v399_v42, %v396_v40 }
 0x2ab   :  { %v552_v44 = vpop.f32.mrf.mxu0 }
 0x2ac   :  { %465 = vst [vmem:[#allocation10] sm:$0xff] %v464_v43  }
 0x2ad   :  { %678 = shalt.err (!%p675_p10)
}
 0x2ae   :  { %424 = dma.vmem_to_hbm [thread:$0]  %s419_s3, 128, %s793_s4, [#allocation4], %s697_s20, %s697_s20, %s698_s21  }
 0x2af   :  { %693 = dma.done.wait [#allocation4], 128  }
 0x2b0   :  { %694 = vsyncadd [#allocation4], 4294967168 }
 0x2b1   :  { %428 = vsyncpa [#allocation3], 1 }
 0x2b2   :  { %429 = vsyncpa [#allocation6], 1 }
 0x2b3   :  { %430 = vsyncpa [#allocation9], 1 }
 0x2b4   :  { %431 = vsyncpa [#allocation4], 1 }

// kernel: tpu_custom_call.1
= control target key start
LH: loop header
LB: loop body
LE: loop exit
PB: predicated region body
PF: predicated region fallthrough
CT: control target
= control target key end

     0   :  { %9 = vsyncpa [#allocation3], 0  ;;  %s789_s0 = inlined_call_operand.hbm [shape: bf16[16,128], index: 0, kind: input, shape index: {}]   ;;  %s790_s1 = inlined_call_operand.hbm [shape: bf16[128,128], index: 1, kind: input, shape index: {}]   ;;  %s791_s2 = inlined_call_operand.hbm [shape: bf16[128,128], index: 2, kind: input, shape index: {}]   ;;  %s792_s3 = inlined_call_operand.hbm [shape: bf16[128,128], index: 3, kind: input, shape index: {}]   ;;  %s793_s4 = inlined_call_operand.hbm [shape: bf16[16,128], index: 4, kind: output, shape index: {}]  }
   0x1   :  { %10 = vsyncpa [#allocation6], 0 }
   0x2   :  { %11 = vsyncpa [#allocation9], 0 }
   0x3   :  { %12 = vsyncpa [#allocation4], 0  ;;  %s695_s15 = smov [#allocation5]   ;;  %s696_s17 = smov [#allocation2]  }
   0x4   :  { %s30_s16 = sshll.u32 %s695_s15, 4  ;;  %s18_s18 = sshll.u32 %s696_s17, 4  ;;  %s31_s16 = int_to_ptr.vmem [resolvable:$true] %s30_s16  ;;  %s19_s18 = int_to_ptr.vmem [resolvable:$true] %s18_s18 }
   0x5   :  { %s595_s19 = scalar_lea.vmem %s31_s16, 1024  ;;  %p600_p1 = scmp.lt.s32.totalorder %s31_s16, %s31_s16 }
   0x6   :  { %p596_p0 = scmp.ne.s32.totalorder %s31_s16, %s595_s19  ;;  %p601_p2 = scmp.lt.s32.totalorder %s595_s19, %s595_s19 }
   0x8   :  { %p602_p3 = por %p601_p2, %p600_p1 }
   0xa   :  { %p603_p4 = pnand %p602_p3, %p596_p0 }
   0xc   :  { %606 = shalt.err (!%p603_p4)
}
   0xd   :  { %s697_s20 = smov 64   ;;  %s698_s21 = smov 4  }
   0xe   :  { %36 = dma.hbm_to_vmem [thread:$0]  %s790_s1, 1024, %s31_s16, [#allocation6], %s697_s20, %s697_s20, %s698_s21  }
   0xf   :  { %s615_s24 = scalar_lea.vmem %s19_s18, 128  ;;  %p620_p6 = scmp.lt.s32.totalorder %s19_s18, %s19_s18 }
  0x10   :  { %p616_p5 = scmp.ne.s32.totalorder %s19_s18, %s615_s24  ;;  %p621_p7 = scmp.lt.s32.totalorder %s615_s24, %s615_s24 }
  0x12   :  { %p622_p8 = por %p621_p7, %p620_p6 }
  0x14   :  { %p623_p9 = pnand %p622_p8, %p616_p5 }
  0x16   :  { %626 = shalt.err (!%p623_p9)
}
  0x17   :  { %24 = dma.hbm_to_vmem [thread:$0]  %s789_s0, 128, %s19_s18, [#allocation3], %s697_s20, %s697_s20, %s698_s21  }
  0x18   :  { %s699_s27 = smov [#allocation7]   ;;  %s700_s29 = smov [#allocation8]  }
  0x19   :  { %s42_s28 = sshll.u32 %s699_s27, 4  ;;  %s54_s30 = sshll.u32 %s700_s29, 4  ;;  %s43_s28 = int_to_ptr.vmem [resolvable:$true] %s42_s28  ;;  %s55_s30 = int_to_ptr.vmem [resolvable:$true] %s54_s30 }
  0x1a   :  { %s635_s1 = scalar_lea.vmem %s43_s28, 1024  ;;  %p640_p11 = scmp.lt.s32.totalorder %s43_s28, %s43_s28 }
  0x1b   :  { %p636_p10 = scmp.ne.s32.totalorder %s43_s28, %s635_s1  ;;  %p641_p12 = scmp.lt.s32.totalorder %s635_s1, %s635_s1 }
  0x1d   :  { %p642_p13 = por %p641_p12, %p640_p11 }
  0x1f   :  { %p643_p0 = pnand %p642_p13, %p636_p10 }
  0x21   :  { %646 = shalt.err (!%p643_p0)
}
  0x22   :  { %48 = dma.hbm_to_vmem [thread:$0]  %s791_s2, 1024, %s43_s28, [#allocation6], %s697_s20, %s697_s20, %s698_s21  }
  0x23   :  { %s655_s0 = scalar_lea.vmem %s55_s30, 1024  ;;  %p660_p2 = scmp.lt.s32.totalorder %s55_s30, %s55_s30 }
  0x24   :  { %p656_p1 = scmp.ne.s32.totalorder %s55_s30, %s655_s0  ;;  %p661_p3 = scmp.lt.s32.totalorder %s655_s0, %s655_s0 }
  0x26   :  { %p662_p4 = por %p661_p3, %p660_p2 }
  0x28   :  { %p663_p5 = pnand %p662_p4, %p656_p1 }
  0x2a   :  { %666 = shalt.err (!%p663_p5)
}
  0x2b   :  { %60 = dma.hbm_to_vmem [thread:$0]  %s792_s3, 1024, %s55_s30, [#allocation9], %s697_s20, %s697_s20, %s698_s21  }
  0x2c   :  { %687 = dma.done.wait [#allocation3], 128  }
  0x2d   :  { %688 = vsyncadd [#allocation3], 4294967168 }
  0x2e   :  { %689 = dma.done.wait [#allocation6], 2048  }
  0x2f   :  { %690 = vsyncadd [#allocation6], 4294965248 }
  0x30   :  { %691 = dma.done.wait [#allocation9], 1024  }
  0x31   :  { %692 = vsyncadd [#allocation9], 4294966272  ;;  %v701_v0 = vmov 0.0   ;;  %vm702_vm0 = vmmov 0   ;;  %v562_v1 = vld [vmem:[#allocation5 + $0x38] sm:$0xff]   ;;  %v563_v2 = vld [vmem:[#allocation5 + $0x30] sm:$0xff]  }
  0x32   :  { %493 = vmatprep.subr.bf16.mxu0 %v701_v0  ;;  %509 = vmatprep.mubr.msk.bf16.mxu0 %vm702_vm0, %v701_v0  ;;  %v564_v3 = vld [vmem:[#allocation5 + $0x28] sm:$0xff]   ;;  %v571_v4 = vld [vmem:[#allocation7 + $0x38] sm:$0xff]   ;;  %v565_v5 = vld [vmem:[#allocation5 + $0x20] sm:$0xff]   ;;  %s703_s2 = smov [#allocation10]  }
  0x33   :  { %513 = vmatprep.subr.bf16.mxu1 %v701_v0  ;;  %529 = vmatprep.mubr.msk.bf16.mxu1 %vm702_vm0, %v701_v0  ;;  %v572_v6 = vld [vmem:[#allocation7 + $0x30] sm:$0xff]   ;;  %v566_v7 = vld [vmem:[#allocation5 + $0x18] sm:$0xff]   ;;  %v573_v8 = vld [vmem:[#allocation7 + $0x28] sm:$0xff]   ;;  %s418_s3 = sshll.u32 %s703_s2, 4  ;;  %s419_s3 = int_to_ptr.vmem [resolvable:$true] %s418_s3 }
  0x34   :  { %494 = vmatpush3.bf16.msra.mxu0 %v562_v1  ;;  %514 = vmatpush3.bf16.msra.mxu1 %v571_v4  ;;  %v567_v9 = vld [vmem:[#allocation5 + $0x10] sm:$0xff]   ;;  %v574_v10 = vld [vmem:[#allocation7 + $0x20] sm:$0xff]   ;;  %v568_v11 = vld [vmem:[#allocation5 + $0x8] sm:$0xff]   ;;  %s667_s9 = scalar_lea.vmem %s419_s3, 128  ;;  %p672_p7 = scmp.lt.s32.totalorder %s419_s3, %s419_s3 }
  0x35   :  { %495 = vmatprep.subr.bf16.mxu0 %v701_v0  ;;  %515 = vmatprep.subr.bf16.mxu1 %v701_v0  ;;  %v575_v12 = vld [vmem:[#allocation7 + $0x18] sm:$0xff]   ;;  %v569_v13 = vld [vmem:[#allocation5] sm:$0xff]   ;;  %v576_v14 = vld [vmem:[#allocation7 + $0x10] sm:$0xff]   ;;  %p668_p6 = scmp.ne.s32.totalorder %s419_s3, %s667_s9  ;;  %p673_p8 = scmp.lt.s32.totalorder %s667_s9, %s667_s9 }
  0x36   :  { %v570_v15 = vld [vmem:[#allocation2] sm:$0xff]   ;;  %v577_v16 = vld [vmem:[#allocation7 + $0x8] sm:$0xff]   ;;  %v578_v17 = vld [vmem:[#allocation7] sm:$0xff]  }
  0x37   :  { %v579_v18 = vld [vmem:[#allocation8 + $0x38] sm:$0xff]   ;;  %v580_v19 = vld [vmem:[#allocation8 + $0x30] sm:$0xff]   ;;  %v581_v20 = vld [vmem:[#allocation8 + $0x28] sm:$0xff]   ;;  %p674_p9 = por %p673_p8, %p672_p7 }
  0x38   :  { %496 = vmatpush3.bf16.msra.mxu0 %v563_v2  ;;  %516 = vmatpush3.bf16.msra.mxu1 %v572_v6  ;;  %v582_v21 = vld [vmem:[#allocation8 + $0x20] sm:$0xff]   ;;  %v583_v22 = vld [vmem:[#allocation8 + $0x18] sm:$0xff]   ;;  %v584_v23 = vld [vmem:[#allocation8 + $0x10] sm:$0xff]  }
  0x39   :  { %497 = vmatprep.subr.bf16.mxu0 %v701_v0  ;;  %517 = vmatprep.subr.bf16.mxu1 %v701_v0  ;;  %v585_v31 = vld [vmem:[#allocation8 + $0x8] sm:$0xff]   ;;  %v586_v32 = vld [vmem:[#allocation8] sm:$0xff]   ;;  %p675_p10 = pnand %p674_p9, %p668_p6 }
  0x3c   :  { %498 = vmatpush3.bf16.msra.mxu0 %v564_v3  ;;  %518 = vmatpush3.bf16.msra.mxu1 %v573_v8 }
  0x3d   :  { %499 = vmatprep.subr.bf16.mxu0 %v701_v0  ;;  %519 = vmatprep.subr.bf16.mxu1 %v701_v0 }
  0x40   :  { %500 = vmatpush3.bf16.msra.mxu0 %v565_v5  ;;  %520 = vmatpush3.bf16.msra.mxu1 %v574_v10 }
  0x41   :  { %501 = vmatprep.subr.bf16.mxu0 %v701_v0  ;;  %521 = vmatprep.subr.bf16.mxu1 %v701_v0 }
  0x44   :  { %502 = vmatpush3.bf16.msra.mxu0 %v566_v7  ;;  %522 = vmatpush3.bf16.msra.mxu1 %v575_v12 }
  0x45   :  { %503 = vmatprep.subr.bf16.mxu0 %v701_v0  ;;  %523 = vmatprep.subr.bf16.mxu1 %v701_v0 }
  0x48   :  { %504 = vmatpush3.bf16.msra.mxu0 %v567_v9  ;;  %524 = vmatpush3.bf16.msra.mxu1 %v576_v14 }
  0x49   :  { %505 = vmatprep.subr.bf16.mxu0 %v701_v0  ;;  %525 = vmatprep.subr.bf16.mxu1 %v701_v0 }
  0x4c   :  { %506 = vmatpush3.bf16.msra.mxu0 %v568_v11  ;;  %526 = vmatpush3.bf16.msra.mxu1 %v577_v16 }
  0x4d   :  { %507 = vmatprep.subr.bf16.mxu0 %v701_v0  ;;  %527 = vmatprep.subr.bf16.mxu1 %v701_v0 }
  0x50   :  { %508 = vmatpush3.bf16.msra.mxu0 %v569_v13  ;;  %528 = vmatpush3.bf16.msra.mxu1 %v578_v17 }
  0x51   :  { %533 = vmatprep.subr.bf16.mxu0 %v701_v0 }
  0x53   :  { %510 = vmatmul.mubr.bf16.vlgmr.msra.gmra.mxu0 %v570_v15 }
  0x54   :  { %549 = vmatprep.mubr.msk.bf16.mxu0 %vm702_vm0, %v701_v0  ;;  %534 = vmatpush3.bf16.msra.mxu0 %v579_v18 }
  0x55   :  { %535 = vmatprep.subr.bf16.mxu0 %v701_v0 }
  0x58   :  { %536 = vmatpush3.bf16.msra.mxu0 %v580_v19 }
  0x59   :  { %537 = vmatprep.subr.bf16.mxu0 %v701_v0 }
  0x5c   :  { %538 = vmatpush3.bf16.msra.mxu0 %v581_v20 }
  0x5d   :  { %539 = vmatprep.subr.bf16.mxu0 %v701_v0 }
  0x60   :  { %540 = vmatpush3.bf16.msra.mxu0 %v582_v21 }
  0x61   :  { %541 = vmatprep.subr.bf16.mxu0 %v701_v0 }
  0x64   :  { %542 = vmatpush3.bf16.msra.mxu0 %v583_v22 }
  0x65   :  { %543 = vmatprep.subr.bf16.mxu0 %v701_v0 }
  0x68   :  { %544 = vmatpush3.bf16.msra.mxu0 %v584_v23 }
  0x69   :  { %545 = vmatprep.subr.bf16.mxu0 %v701_v0 }
  0x6c   :  { %546 = vmatpush3.bf16.msra.mxu0 %v585_v31 }
  0x6d   :  { %547 = vmatprep.subr.bf16.mxu0 %v701_v0 }
  0x70   :  { %548 = vmatpush3.bf16.msra.mxu0 %v586_v32 }
 0x113   :  { %v180_v24 = vpop.f32.mrf.mxu0 }
 0x114   :  { %v187_v27 = vmax.f32 %v180_v24, 0.0 }
 0x115   :  { %v511_v25 = vpop.f32.mrf.mxu0 }
 0x117   :  { %v183_v26 = vpop.f32.mrf.mxu0 }
 0x118   :  { %v188_v28 = vmax.f32 %v183_v26, 0.0 }
 0x119   :  { %v512_v29 = vpop.f32.mrf.mxu0 }
 0x11a   :  { %v189_v30 = vpack.c.bf16 %v188_v28, %v187_v27 }
 0x11c   :  { %530 = vmatmul.mubr.bf16.vlgmr.msra.gmra.mxu1 %v189_v30 }
 0x1dc   :  { %v288_v33 = vpop.f32.mrf.mxu1 }
 0x1dd   :  { %v295_v36 = vmax.f32 %v288_v33, 0.0 }
 0x1de   :  { %v531_v34 = vpop.f32.mrf.mxu1 }
 0x1e0   :  { %v291_v35 = vpop.f32.mrf.mxu1 }
 0x1e1   :  { %v296_v37 = vmax.f32 %v291_v35, 0.0 }
 0x1e2   :  { %v532_v38 = vpop.f32.mrf.mxu1 }
 0x1e3   :  { %v297_v39 = vpack.c.bf16 %v296_v37, %v295_v36 }
 0x1e5   :  { %550 = vmatmul.mubr.bf16.vlgmr.msra.gmra.mxu0 %v297_v39 }
 0x2a5   :  { %v396_v40 = vpop.f32.mrf.mxu0 }
 0x2a7   :  { %v551_v41 = vpop.f32.mrf.mxu0 }
 0x2a9   :  { %v399_v42 = vpop.f32.mrf.mxu0 }
 0x2aa   :  { %v464_v43 = vpack.c.bf16 %v399_v42, %v396_v40 }
 0x2ab   :  { %v552_v44 = vpop.f32.mrf.mxu0 }
 0x2ac   :  { %465 = vst [vmem:[#allocation10] sm:$0xff] %v464_v43  }
 0x2ad   :  { %678 = shalt.err (!%p675_p10)
}
 0x2ae   :  { %424 = dma.vmem_to_hbm [thread:$0]  %s419_s3, 128, %s793_s4, [#allocation4], %s697_s20, %s697_s20, %s698_s21  }
 0x2af   :  { %693 = dma.done.wait [#allocation4], 128  }
 0x2b0   :  { %694 = vsyncadd [#allocation4], 4294967168 }
 0x2b1   :  { %428 = vsyncpa [#allocation3], 1 }
 0x2b2   :  { %429 = vsyncpa [#allocation6], 1 }
 0x2b3   :  { %430 = vsyncpa [#allocation9], 1 }
 0x2b4   :  { %431 = vsyncpa [#allocation4], 1 }

</bundles_post_ra>
